<compile_context>
chip_gen: v7x
topology: tpu7x:2x2x1
jax: 0.10.0
libtpu: 0.0.40
codegen_flags: <defaults>
</compile_context>

<pallas_src>
import functools

import jax
import jax.numpy as jnp
from jax.experimental import pallas as pl
from jax.experimental.pallas import tpu as pltpu


# ----------------------------------------------------------------------------
# Fused QKV projection kernel: (TR, C) @ (C, Ctot) + bias -> bf16
# ----------------------------------------------------------------------------
def _qkv_proj_kernel(x_ref, w_ref, b_ref, o_ref):
    x = x_ref[...].astype(jnp.bfloat16)                           # (TR, C)
    w = w_ref[...].astype(jnp.bfloat16)                           # (C, Ctot)
    acc = jnp.dot(x, w, preferred_element_type=jnp.float32) + b_ref[...]
    o_ref[...] = acc.astype(o_ref.dtype)                          # (TR, Ctot) bf16


# ----------------------------------------------------------------------------
# Attention kernel: one (batch, query-tile) grid step.
# ----------------------------------------------------------------------------
def _attn_kernel(Ck, C, x_ref, qkv_ref, gamma_ref, o_ref):
    """
    x_ref     : (1, TQ, C)     f32   residual rows of this query tile
    qkv_ref   : (1, N, Ctot)   bf16  fused [q | k | v] for this batch element
    gamma_ref : (1,)           f32   SMEM scalar
    o_ref     : (1, TQ, C)
    """
    TQ = x_ref.shape[1]
    qi = pl.program_id(1)
    row0 = pl.multiple_of(qi * TQ, TQ)

    # Static column slices of the fused buffer (single lane-padded block).
    q = qkv_ref[0, pl.ds(row0, TQ), :][:, :Ck]                    # (TQ, Ck) bf16
    k = qkv_ref[0, :, Ck:2 * Ck]                                  # (N,  Ck) bf16
    v = qkv_ref[0, :, 2 * Ck:2 * Ck + C]                          # (N,  C)  bf16

    # energy[i, j] = <q_i, k_j>; contracted on the last dims (no k relayout).
    energy = jax.lax.dot_general(
        q, k, dimension_numbers=(((1,), (1,)), ((), ())),
        preferred_element_type=jnp.float32)                       # (TQ, N) f32

    # Numerically stable softmax; exp in bf16 (EUP), row-sum in f32,
    # normalization deferred past the PV matmul (N*C mul instead of N*N).
    m = jnp.max(energy, axis=-1, keepdims=True)                   # (TQ, 1) f32
    p = jnp.exp((energy - m).astype(jnp.bfloat16))                # (TQ, N) bf16
    l = jnp.sum(p.astype(jnp.float32), axis=-1, keepdims=True)    # (TQ, 1) f32

    out = jnp.dot(p, v, preferred_element_type=jnp.float32)       # (TQ, C) f32
    out = out * pl.reciprocal(l, approx=True)

    gamma = gamma_ref[0]
    o_ref[0] = (gamma * out + x_ref[0]).astype(o_ref.dtype)


# ----------------------------------------------------------------------------
# Tiling / VMEM helpers
# ----------------------------------------------------------------------------
def _vmem_capacity_bytes():
    try:
        return int(pltpu.get_tpu_info().vmem_capacity_bytes)
    except Exception:
        return 64 * 2**20        # conservative (v7x physical) fallback


def _pick_divisor_tile(n, candidates, max_rows):
    """Largest candidate that divides n and fits max_rows; else full extent."""
    for cand in candidates:
        if cand <= max_rows and n % cand == 0:
            return cand
    return n


# ----------------------------------------------------------------------------
# Wrapper
# ----------------------------------------------------------------------------
def self_attention_3d(x, wq, bq, wk, bk, wv, bv, gamma):
    """x: (B, C, D, H, W) float32.  Conv weights stored as (C_in, C_out)."""
    B, C, D, H, W = x.shape
    N = D * H * W
    Ck = wq.shape[1]
    Ctot = 2 * Ck + C

    vmem_cap = _vmem_capacity_bytes()

    # (B, C, N) -> (B, N, C): channel-last so C rides the lane axis.
    x_flat = jnp.transpose(x.reshape(B, C, N), (0, 2, 1))

    # Fused projection weight / bias.
    w_qkv = jnp.concatenate([wq, wk, wv], axis=1)                 # (C, Ctot)
    b_qkv = jnp.concatenate([bq, bk, bv]).reshape(1, Ctot)        # (1, Ctot)
    gamma_s = jnp.asarray(gamma, jnp.float32).reshape(1)          # (1,) SMEM

    # ---- Stage 1: fused QKV projection (tiny pipelined matmul) -------------
    BN = B * N
    TR = _pick_divisor_tile(BN, (1024, 512, 256, 128, 64, 32, 16, 8), BN)
    x2d = x_flat.reshape(BN, C)

    qkv = pl.pallas_call(
        _qkv_proj_kernel,
        out_shape=jax.ShapeDtypeStruct((BN, Ctot), jnp.bfloat16),
        grid=(BN // TR,),
        in_specs=[
            pl.BlockSpec((TR, C), lambda r: (r, 0)),
            pl.BlockSpec((C, Ctot), lambda r: (0, 0)),
            pl.BlockSpec((1, Ctot), lambda r: (0, 0)),
        ],
        out_specs=pl.BlockSpec((TR, Ctot), lambda r: (r, 0)),
        compiler_params=pltpu.CompilerParams(
            dimension_semantics=("parallel",)),
    )(x2d, w_qkv, b_qkv)
    qkv = qkv.reshape(B, N, Ctot)

    # ---- Stage 2: attention -------------------------------------------------
    # Generation-aware query tile: budget the (TQ, N) softmax temporaries
    # (~12 B / element: f32 energy + f32 shifted + bf16 exp + slack).
    energy_budget = min(24 * 2**20, vmem_cap // 5)
    max_rows = max(8, energy_budget // (12 * N))
    TQ = _pick_divisor_tile(N, (512, 256, 128, 64, 32, 16, 8), max_rows)
    NQ = N // TQ

    lane = 128
    bf16b, f32b = 2, 4
    vmem_est = (
        2 * N * max(Ctot, lane) * bf16b        # fused qkv block (double-buffered)
        + 4 * TQ * max(C, lane) * f32b         # x tile + out tile (double-buffered)
        + 4 * TQ * N * f32b                    # energy / softmax temporaries
        + 2 * N * lane * bf16b                 # k / v value copies (lane-padded)
        + (4 << 20)                            # slack
    )
    vmem_limit = int(max(min(vmem_est, int(0.75 * vmem_cap)), 32 * 2**20))

    kernel = functools.partial(_attn_kernel, Ck, C)

    out_flat = pl.pallas_call(
        kernel,
        out_shape=jax.ShapeDtypeStruct((B, N, C), x.dtype),
        grid=(B, NQ),
        in_specs=[
            pl.BlockSpec((1, TQ, C), lambda b, q: (b, q, 0)),      # residual rows
            pl.BlockSpec((1, N, Ctot), lambda b, q: (b, 0, 0)),    # fused qkv
            pl.BlockSpec(memory_space=pltpu.MemorySpace.SMEM),     # gamma
        ],
        out_specs=pl.BlockSpec((1, TQ, C), lambda b, q: (b, q, 0)),
        compiler_params=pltpu.CompilerParams(
            # No cross-iteration scratch carry -> both axes parallel (megacore).
            dimension_semantics=("parallel", "parallel"),
            vmem_limit_bytes=vmem_limit),
    )(x_flat, qkv, gamma_s)

    return jnp.transpose(out_flat, (0, 2, 1)).reshape(B, C, D, H, W)


# ----------------------------------------------------------------------------
# Pure-JAX f32 reference mirroring the PyTorch forward.
# ----------------------------------------------------------------------------
def _reference(x, wq, bq, wk, bk, wv, bv, gamma):
    B, C, D, H, W = x.shape
    N = D * H * W
    xf = x.reshape(B, C, N)                                       # (B, C, N)
    q = jnp.einsum('bcn,ck->bkn', xf, wq) + bq[None, :, None]     # (B, Ck, N)
    k = jnp.einsum('bcn,ck->bkn', xf, wk) + bk[None, :, None]
    v = jnp.einsum('bcn,cd->bdn', xf, wv) + bv[None, :, None]     # (B, C, N)
    energy = jnp.einsum('bkn,bkm->bnm', q, k)                     # (B, N, N)
    att = jax.nn.softmax(energy, axis=-1)
    out = jnp.einsum('bcm,bnm->bcn', v, att)                      # (B, C, N)
    out = out.reshape(B, C, D, H, W)
    return gamma[0] * out + x


if __name__ == "__main__":
    B, C, D, H, W = 2, 32, 4, 4, 4
    Ck = C // 8

    key = jax.random.PRNGKey(0)
    kx, k1, k2, k3, k4, k5, k6 = jax.random.split(key, 7)

    x = jax.random.normal(kx, (B, C, D, H, W), dtype=jnp.float32)

    # Conv3d 1x1x1 weights stored transposed as (C_in, C_out) for the
    # channel-last matmul formulation.
    wq = 0.1 * jax.random.normal(k1, (C, Ck), dtype=jnp.float32)
    bq = 0.1 * jax.random.normal(k2, (Ck,),   dtype=jnp.float32)
    wk = 0.1 * jax.random.normal(k3, (C, Ck), dtype=jnp.float32)
    bk = 0.1 * jax.random.normal(k4, (Ck,),   dtype=jnp.float32)
    wv = 0.1 * jax.random.normal(k5, (C, C),  dtype=jnp.float32)
    bv = 0.1 * jax.random.normal(k6, (C,),    dtype=jnp.float32)
    # PyTorch init is gamma = 0 (output == x); use a nonzero value so the
    # attention path is actually exercised / checked.
    gamma = jnp.array([0.5], dtype=jnp.float32)

    out = self_attention_3d(x, wq, bq, wk, bk, wv, bv, gamma)
    out = jax.block_until_ready(out)

    ref = _reference(x, wq, bq, wk, bk, wv, bv, gamma)
    assert out.shape == (B, C, D, H, W)
    # bf16 MXU / EUP operands with f32 accumulation -> compare against the f32
    # reference with a correspondingly looser tolerance.
    assert jnp.allclose(out, ref, atol=5e-2, rtol=5e-2), "mismatch vs reference"

    print("KERNEL_OK")
</pallas_src>

<mosaic_0001>
module attributes {stable_mosaic.version = 11 : i64} {
  func.func @_qkv_proj_kernel(%arg0: i32, %arg1: memref<128x32xf32, #tpu.memory_space<vmem>>, %arg2: memref<32x40xf32, #tpu.memory_space<vmem>>, %arg3: memref<1x40xf32, #tpu.memory_space<vmem>>, %arg4: memref<128x40xbf16, #tpu.memory_space<vmem>>) attributes {dimension_semantics = [#tpu.dimension_semantics<parallel>], iteration_bounds = array<i64: 1>, scalar_prefetch = 0 : i64, scratch_operands = 0 : i64, tpu.core_type = #tpu.core_type<tc>, window_params = [{transform_indices = @transform_0, window_bounds = array<i64: 128, 32>}, {pipeline_mode = #tpu.pipeline_mode<synchronous>, transform_indices = @transform_1, window_bounds = array<i64: 32, 40>}, {pipeline_mode = #tpu.pipeline_mode<synchronous>, transform_indices = @transform_2, window_bounds = array<i64: 1, 40>}, {transform_indices = @transform_3, window_bounds = array<i64: 128, 40>}]} {
    %c0 = arith.constant 0 : index
    %c0_0 = arith.constant 0 : index
    %0 = vector.load %arg1[%c0, %c0_0] : memref<128x32xf32, #tpu.memory_space<vmem>>, vector<128x32xf32>
    %1 = arith.truncf %0 : vector<128x32xf32> to vector<128x32xbf16>
    %c0_1 = arith.constant 0 : index
    %c0_2 = arith.constant 0 : index
    %2 = vector.load %arg2[%c0_1, %c0_2] : memref<32x40xf32, #tpu.memory_space<vmem>>, vector<32x40xf32>
    %3 = arith.truncf %2 : vector<32x40xf32> to vector<32x40xbf16>
    %cst = arith.constant dense<0.000000e+00> : vector<128x40xf32>
    %4 = tpu.matmul %1, %3, %cst {dimension_numbers = #tpu.dot_dimension_numbers<[1], [0], [0], [1], [0, 0, 1, 1], [], []>} : vector<128x32xbf16>, vector<32x40xbf16>, vector<128x40xf32> -> vector<128x40xf32>
    %c0_3 = arith.constant 0 : index
    %c0_4 = arith.constant 0 : index
    %5 = vector.load %arg3[%c0_3, %c0_4] : memref<1x40xf32, #tpu.memory_space<vmem>>, vector<1x40xf32>
    %6 = vector.broadcast %5 : vector<1x40xf32> to vector<128x40xf32>
    %7 = arith.addf %4, %6 : vector<128x40xf32>
    %8 = arith.truncf %7 : vector<128x40xf32> to vector<128x40xbf16>
    %c0_5 = arith.constant 0 : index
    %c0_6 = arith.constant 0 : index
    %9 = vector.load %arg4[%c0_5, %c0_6] : memref<128x40xbf16, #tpu.memory_space<vmem>>, vector<128x40xbf16>
    tpu.vector_store %arg4[%c0_5, %c0_6], %8 {strides = array<i32>} : memref<128x40xbf16, #tpu.memory_space<vmem>>, vector<128x40xbf16>,
    return
  }
  func.func @transform_0(%arg0: i32) -> (i32, i32) {
    %c0_i32 = arith.constant 0 : i32
    %c0_i32_0 = arith.constant 0 : i32
    return %arg0, %c0_i32 : i32, i32
  }
  func.func @transform_1(%arg0: i32) -> (i32, i32) {
    %c0_i32 = arith.constant 0 : i32
    %c0_i32_0 = arith.constant 0 : i32
    %c0_i32_1 = arith.constant 0 : i32
    return %c0_i32, %c0_i32_0 : i32, i32
  }
  func.func @transform_2(%arg0: i32) -> (i32, i32) {
    %c0_i32 = arith.constant 0 : i32
    %c0_i32_0 = arith.constant 0 : i32
    %c0_i32_1 = arith.constant 0 : i32
    return %c0_i32, %c0_i32_0 : i32, i32
  }
  func.func @transform_3(%arg0: i32) -> (i32, i32) {
    %c0_i32 = arith.constant 0 : i32
    %c0_i32_0 = arith.constant 0 : i32
    return %arg0, %c0_i32 : i32, i32
  }
}

</mosaic_0001>

<bundles_post_ra>
// kernel: tpu_custom_call.1
= control target key start
LH: loop header
LB: loop body
LE: loop exit
PB: predicated region body
PF: predicated region fallthrough
CT: control target
= control target key end

     0   :  { %vm52_vm0 = vcmask 261120   ;;  %vm238_vm1 = vcmask 322560   ;;  %s489_s1 = inlined_call_operand.vmem [shape: f32[32,40], index: 1, kind: input, shape index: {}]   ;;  %s490_s0 = inlined_call_operand.vmem [shape: f32[128,32], index: 0, kind: input, shape index: {}]   ;;  %s491_s2 = inlined_call_operand.vmem [shape: f32[1,40], index: 2, kind: input, shape index: {}]   ;;  %s492_s3 = inlined_call_operand.vmem [shape: bf16[128,40], index: 3, kind: output, shape index: {}]  }
   0x1   :  { %v39_v0 = vld [vmem:[%s489_s1] sm:$0xff]  ;;  %v40_v1 = vld [vmem:[%s489_s1 + $0x8] sm:$0xff]  ;;  %v41_v2 = vld [vmem:[%s489_s1 + $0x10] sm:$0xff] }
   0x2   :  { %v43_v3 = vpack.c.bf16 %v40_v1, %v39_v0  ;;  %v42_v4 = vld [vmem:[%s489_s1 + $0x18] sm:$0xff]  ;;  %v15_v5 = vld [vmem:[%s490_s0] sm:$0xff]  ;;  %v16_v6 = vld [vmem:[%s490_s0 + $0x8] sm:$0xff] }
   0x3   :  { %v44_v7 = vpack.c.bf16 %v42_v4, %v41_v2  ;;  %v31_v8 = vpack.c.bf16 %v16_v6, %v15_v5  ;;  %v23_v9 = vld [vmem:[%s490_s0 + $0x40] sm:$0xff]  ;;  %v24_v10 = vld [vmem:[%s490_s0 + $0x48] sm:$0xff]  ;;  %v17_v12 = vld [vmem:[%s490_s0 + $0x10] sm:$0xff] }
   0x4   :  { %310 = vmatprep.subr.bf16.mxu0 %v43_v3  ;;  %330 = vmatprep.subr.bf16.mxu1 %v43_v3  ;;  %v35_v11 = vpack.c.bf16 %v24_v10, %v23_v9  ;;  %v18_v13 = vld [vmem:[%s490_s0 + $0x18] sm:$0xff]  ;;  %v25_v14 = vld [vmem:[%s490_s0 + $0x50] sm:$0xff]  ;;  %v19_v16 = vld [vmem:[%s490_s0 + $0x20] sm:$0xff] }
   0x5   :  { %311 = vmatpush3.bf16.msra.mxu0 %v43_v3  ;;  %332 = vmatpush3.bf16.msra.mxu1 %v43_v3  ;;  %v26_v15 = vld [vmem:[%s490_s0 + $0x58] sm:$0xff]  ;;  %v20_v17 = vld [vmem:[%s490_s0 + $0x28] sm:$0xff]  ;;  %v27_v18 = vld [vmem:[%s490_s0 + $0x60] sm:$0xff]  ;;  %v32_v20 = vpack.c.bf16 %v18_v13, %v17_v12 }
   0x6   :  { %312 = vmatprep.subr.bf16.mxu0 %v44_v7  ;;  %331 = vmatprep.subr.bf16.mxu1 %v44_v7  ;;  %v28_v19 = vld [vmem:[%s490_s0 + $0x68] sm:$0xff]  ;;  %v36_v21 = vpack.c.bf16 %v26_v15, %v25_v14  ;;  %v33_v22 = vpack.c.bf16 %v20_v17, %v19_v16  ;;  %v21_v24 = vld [vmem:[%s490_s0 + $0x30] sm:$0xff]  ;;  %v22_v25 = vld [vmem:[%s490_s0 + $0x38] sm:$0xff] }
   0x7   :  { %314 = vmatprep.mubr.msk.bf16.mxu0 %vm52_vm0, %v31_v8  ;;  %322 = vmatprep.mubr.msk.bf16.mxu1 %vm52_vm0, %v35_v11  ;;  %v37_v23 = vpack.c.bf16 %v28_v19, %v27_v18  ;;  %v29_v26 = vld [vmem:[%s490_s0 + $0x70] sm:$0xff]  ;;  %v30_v27 = vld [vmem:[%s490_s0 + $0x78] sm:$0xff]  ;;  %v34_v28 = vpack.c.bf16 %v22_v25, %v21_v24  ;;  %v259_v30 = vld [vmem:[%s491_s2] ss:$0 sm:$0xff] }
   0x8   :  { %v38_v29 = vpack.c.bf16 %v30_v27, %v29_v26 }
   0x9   :  { %313 = vmatpush3.bf16.msra.mxu0 %v44_v7  ;;  %333 = vmatpush3.bf16.msra.mxu1 %v44_v7 }
   0xc   :  { %315 = vmatmul.mubr.msk.bf16.vlgmr.msra.gmra.mrb[0].mxu0 %vm52_vm0, %v32_v20  ;;  %323 = vmatmul.mubr.msk.bf16.vlgmr.msra.gmra.mrb[0].mxu1 %vm52_vm0, %v36_v21 }
   0xd   :  { %318 = vmatprep.mubr.msk.bf16.mxu0 %vm52_vm0, %v33_v22  ;;  %326 = vmatprep.mubr.msk.bf16.mxu1 %vm52_vm0, %v37_v23 }
  0x14   :  { %319 = vmatmul.mubr.msk.bf16.gmra.mrb[4].mxu0 %vm52_vm0, %v34_v28  ;;  %327 = vmatmul.mubr.msk.bf16.gmra.mrb[4].mxu1 %vm52_vm0, %v38_v29 }
  0xdf   :  { %v316_v31 = vpop.f32.mrb[0].mxu0  ;;  %v324_v32 = vpop.f32.mrb[0].mxu1 }
  0xe0   :  { %v120_v33 = vadd.f32 %v316_v31, %v259_v30  ;;  %v152_v34 = vadd.f32 %v324_v32, %v259_v30  ;;  %v111_v35 = vpop.f32.mrb[1].mxu0  ;;  %v143_v36 = vpop.f32.mrb[1].mxu1 }
  0xe1   :  { %v112_v37 = vadd.f32 %v259_v30, %v111_v35  ;;  %v144_v38 = vadd.f32 %v259_v30, %v143_v36  ;;  %v317_v39 = vpop.f32.mrb[2].mxu0  ;;  %v325_v40 = vpop.f32.mrb[2].mxu1 }
  0xe2   :  { %v286_v41 = vpack.c.bf16 %v120_v33, %v120_v33  ;;  %v294_v42 = vpack.c.bf16 %v152_v34, %v152_v34  ;;  %v123_v43 = vadd.f32 %v317_v39, %v259_v30  ;;  %v155_v44 = vadd.f32 %v325_v40, %v259_v30  ;;  %v114_v45 = vpop.f32.mrb[3].mxu0  ;;  %v146_v46 = vpop.f32.mrb[3].mxu1 }
  0xe3   :  { %v284_v47 = vpack.c.bf16 %v112_v37, %v112_v37  ;;  %v292_v48 = vpack.c.bf16 %v144_v38, %v144_v38  ;;  %v115_v49 = vadd.f32 %v259_v30, %v114_v45  ;;  %v147_v50 = vadd.f32 %v259_v30, %v146_v46 }
  0xe4   :  { %241 = vst.msk [vmem:[%s492_s3 + $0x8] sm:$0xf] %vm238_vm1, %v286_v41  ;;  %249 = vst.msk [vmem:[%s492_s3 + $0x28] sm:$0xf] %vm238_vm1, %v294_v42  ;;  %v287_v51 = vpack.c.bf16 %v123_v43, %v123_v43  ;;  %v295_v52 = vpack.c.bf16 %v155_v44, %v155_v44 }
  0xe5   :  { %239 = vst.msk [vmem:[%s492_s3] sm:$0xf] %vm238_vm1, %v284_v47  ;;  %247 = vst.msk [vmem:[%s492_s3 + $0x20] sm:$0xf] %vm238_vm1, %v292_v48  ;;  %v285_v53 = vpack.c.bf16 %v115_v49, %v115_v49  ;;  %v293_v54 = vpack.c.bf16 %v147_v50, %v147_v50 }
  0xe6   :  { %242 = vst.msk [vmem:[%s492_s3 + $0xc] sm:$0xf] %vm238_vm1, %v287_v51  ;;  %250 = vst.msk [vmem:[%s492_s3 + $0x2c] sm:$0xf] %vm238_vm1, %v295_v52 }
  0xe7   :  { %240 = vst.msk [vmem:[%s492_s3 + $0x4] sm:$0xf] %vm238_vm1, %v285_v53  ;;  %248 = vst.msk [vmem:[%s492_s3 + $0x24] sm:$0xf] %vm238_vm1, %v293_v54  ;;  %v320_v55 = vpop.f32.mrb[4].mxu0  ;;  %v328_v56 = vpop.f32.mrb[4].mxu1 }
  0xe8   :  { %v136_v57 = vadd.f32 %v320_v55, %v259_v30  ;;  %v168_v58 = vadd.f32 %v328_v56, %v259_v30  ;;  %v127_v59 = vpop.f32.mrb[5].mxu0  ;;  %v159_v60 = vpop.f32.mrb[5].mxu1 }
  0xe9   :  { %v128_v61 = vadd.f32 %v259_v30, %v127_v59  ;;  %v160_v62 = vadd.f32 %v259_v30, %v159_v60  ;;  %v321_v63 = vpop.f32.mrb[6].mxu0  ;;  %v329_v0 = vpop.f32.mrb[6].mxu1 }
  0xea   :  { %v290_v1 = vpack.c.bf16 %v136_v57, %v136_v57  ;;  %v298_v2 = vpack.c.bf16 %v168_v58, %v168_v58  ;;  %v139_v3 = vadd.f32 %v321_v63, %v259_v30  ;;  %v171_v4 = vadd.f32 %v329_v0, %v259_v30  ;;  %v130_v5 = vpop.f32.mrb[7].mxu0  ;;  %v162_v6 = vpop.f32.mrb[7].mxu1 }
  0xeb   :  { %v288_v7 = vpack.c.bf16 %v128_v61, %v128_v61  ;;  %v296_v8 = vpack.c.bf16 %v160_v62, %v160_v62  ;;  %v131_v9 = vadd.f32 %v259_v30, %v130_v5  ;;  %v163_v10 = vadd.f32 %v259_v30, %v162_v6 }
  0xec   :  { %245 = vst.msk [vmem:[%s492_s3 + $0x18] sm:$0xf] %vm238_vm1, %v290_v1  ;;  %253 = vst.msk [vmem:[%s492_s3 + $0x38] sm:$0xf] %vm238_vm1, %v298_v2  ;;  %v291_v11 = vpack.c.bf16 %v139_v3, %v139_v3  ;;  %v299_v12 = vpack.c.bf16 %v171_v4, %v171_v4 }
  0xed   :  { %243 = vst.msk [vmem:[%s492_s3 + $0x10] sm:$0xf] %vm238_vm1, %v288_v7  ;;  %251 = vst.msk [vmem:[%s492_s3 + $0x30] sm:$0xf] %vm238_vm1, %v296_v8  ;;  %v289_v13 = vpack.c.bf16 %v131_v9, %v131_v9  ;;  %v297_v14 = vpack.c.bf16 %v163_v10, %v163_v10 }
  0xee   :  { %246 = vst.msk [vmem:[%s492_s3 + $0x1c] sm:$0xf] %vm238_vm1, %v291_v11  ;;  %254 = vst.msk [vmem:[%s492_s3 + $0x3c] sm:$0xf] %vm238_vm1, %v299_v12 }
  0xef   :  { %244 = vst.msk [vmem:[%s492_s3 + $0x14] sm:$0xf] %vm238_vm1, %v289_v13  ;;  %252 = vst.msk [vmem:[%s492_s3 + $0x34] sm:$0xf] %vm238_vm1, %v297_v14 }

</bundles_post_ra>
